<compile_context>
chip_gen: v6e
topology: v6e:2x2x1
jax: 0.10.0
libtpu: 0.0.40
codegen_flags: <defaults>
</compile_context>

<pallas_src>
import functools
import math

import jax
import jax.numpy as jnp
from jax.experimental import pallas as pl
from jax.experimental.pallas import tpu as pltpu

_NEG_LOG_1E4 = -math.log(1e-4)  # -log(clip(0, 1e-4, 1)) for every off-target RCE term


def _mae_rce_kernel(pred_ref, labels_ref, out_ref, *, alpha, beta, n_true, tn,
                    num_classes, transpose_in_kernel):
    i = pl.program_id(0)
    last = pl.num_programs(0) - 1
    c = num_classes

    x = pred_ref[...].astype(jnp.float32)
    if transpose_in_kernel:
        # Native (TN, C) block -> lane-dense (C, TN): classes on sublanes, batch on
        # the 128-wide lane axis (VPU/EUP lanes ~fully used even for tiny C).
        x = jnp.transpose(x)
    labels = labels_ref[...]                                       # (1, TN) int32

    # ---- softmax pieces over the class (sublane) axis; exp is the only full
    # ---- (C, TN) EUP pass ----
    m = jnp.max(x, axis=0, keepdims=True)                          # (1, TN)
    e = jnp.exp(x - m)                                             # (C, TN)
    s = jnp.sum(e, axis=0, keepdims=True)                          # (1, TN)
    inv_s = 1.0 / s                                                # exact; only (1, TN)

    # ---- target-class numerator via one-hot select (no dynamic gather on TPU) ----
    class_ids = jax.lax.broadcasted_iota(jnp.int32, (c, 1), 0)     # (C, 1), not (C, TN)
    onehot = class_ids == labels                                   # (C, TN) bool
    e_t = jnp.sum(jnp.where(onehot, e, 0.0), axis=0, keepdims=True)
    p_t = e_t * inv_s                                              # softmax prob of target

    # ---- RCE with the log eliminated algebraically; probabilities never formed:
    # sum_c clip(p, 1e-7, 1) == (sum_c max(e, 1e-7 * s)) / s  (upper clip is a no-op)
    sum_clip = jnp.sum(jnp.maximum(e, 1e-7 * s), axis=0, keepdims=True) * inv_s
    p_t_clip = jnp.maximum(p_t, 1e-7)

    per_ex = alpha * (1.0 - p_t) + (beta * _NEG_LOG_1E4) * (sum_clip - p_t_clip)

    lane = jax.lax.broadcasted_iota(jnp.int32, (1, 128), 1)

    def _write(vals):
        partial = jnp.sum(vals)                                    # this tile's partial sum
        out_ref[...] = jnp.where(lane == 0, partial, 0.0)          # lane-aligned (1,128) store

    @pl.when(i == last)
    def _():
        # Only the final (possibly partial) tile pays for the batch mask.  Keep it a
        # select (not a multiply) so NaNs from garbage out-of-range columns stay put.
        col = i * tn + jax.lax.broadcasted_iota(jnp.int32, (1, tn), 1)
        _write(jnp.where(col < n_true, per_ex, 0.0))

    @pl.when(i != last)
    def _():
        _write(per_ex)


def _choose_tn(n, c, in_itemsize, transpose_in_kernel, tn_cap,
               budget_bytes=24 * 1024 * 1024):
    """Largest batch-tile that keeps the per-tile VMEM footprint under budget."""
    c_sub = -(-c // 8) * 8        # sublane padding of (C, TN) f32 intermediates
    c_lane = -(-c // 128) * 128   # lane padding of a (TN, C) row-layout VMEM block
    if transpose_in_kernel:
        per_col = (2 * c_lane * in_itemsize   # double-buffered native-layout input block
                   + c_lane * 4               # in-kernel f32 copy / transpose source
                   + 8 * c_sub * 4            # ~8 live (C, TN)-shaped f32 intermediates
                   + 2 * 8 * 4)               # labels block (double-buffered, 8-sublane tile)
    else:
        per_col = (2 * c_sub * in_itemsize    # double-buffered pre-transposed (C, TN) block
                   + 8 * c_sub * 4
                   + 2 * 8 * 4)
    tn = budget_bytes // per_col
    tn = min(tn, tn_cap)
    tn = max(128, (tn // 128) * 128)
    if n <= tn:
        return n                  # single tile: block == full batch (always legal)
    return tn


def _mae_rce_call(pred, labels2d, *, alpha, beta, transpose_in_kernel, tn_cap):
    n, c = pred.shape
    tn = _choose_tn(n, c, jnp.dtype(pred.dtype).itemsize, transpose_in_kernel, tn_cap)
    num_tiles = pl.cdiv(n, tn)

    if transpose_in_kernel:
        pred_in = pred                                      # native layout: no extra HBM pass
        pred_spec = pl.BlockSpec((tn, c), lambda i: (i, 0))
    else:
        # Fallback only: one wrapper transpose (pure XLA), kernel skips the in-kernel one.
        pred_in = jnp.transpose(pred)
        pred_spec = pl.BlockSpec((c, tn), lambda i: (0, i))

    kernel = functools.partial(
        _mae_rce_kernel, alpha=float(alpha), beta=float(beta), n_true=n, tn=tn,
        num_classes=c, transpose_in_kernel=transpose_in_kernel)

    out = pl.pallas_call(
        kernel,
        out_shape=jax.ShapeDtypeStruct((1, num_tiles * 128), jnp.float32),
        grid=(num_tiles,),
        in_specs=[
            pred_spec,
            pl.BlockSpec((1, tn), lambda i: (0, i)),        # labels tile, lane-dense
        ],
        out_specs=pl.BlockSpec((1, 128), lambda i: (0, i)), # per-tile partial sums
        compiler_params=pltpu.CompilerParams(
            dimension_semantics=("parallel",),              # v7x: shard tiles over both TCs
            vmem_limit_bytes=48 * 1024 * 1024),             # matches the 24 MiB tile budget
    )(pred_in, labels2d)

    return jnp.sum(out) * (1.0 / n)


def mae_and_rce(pred, labels, *, alpha=1.0, beta=1.0, tn_cap=32768):
    """pred: (N, C) logits (any float dtype); labels: (N,) int. Returns scalar f32."""
    labels2d = labels.reshape(1, -1).astype(jnp.int32)
    try:
        return _mae_rce_call(pred, labels2d, alpha=alpha, beta=beta,
                             transpose_in_kernel=True, tn_cap=tn_cap)
    except Exception:
        # Graceful degradation if this Mosaic build cannot lower the unaligned
        # (TN, C) -> (C, TN) in-kernel transpose: fall back to a single wrapper
        # transpose (the only extra HBM pass) with the identical kernel body.
        return _mae_rce_call(pred, labels2d, alpha=alpha, beta=beta,
                             transpose_in_kernel=False, tn_cap=tn_cap)


def _reference(pred, labels, alpha, beta, num_classes):
    # Pure-JAX mirror of the PyTorch MAEandRCE module.
    p = jax.nn.softmax(pred.astype(jnp.float32), axis=1)
    oh = jax.nn.one_hot(labels, num_classes, dtype=jnp.float32)
    mae = 1.0 - jnp.sum(oh * p, axis=1)
    p_clip = jnp.clip(p, 1e-7, 1.0)
    oh_clip = jnp.clip(oh, 1e-4, 1.0)
    rce = -jnp.sum(p_clip * jnp.log(oh_clip), axis=1)
    return alpha * jnp.mean(mae) + beta * jnp.mean(rce)


if __name__ == "__main__":
    key = jax.random.PRNGKey(0)
    k1, k2, k3, k4 = jax.random.split(key, 4)

    # Module hyperparameters (deterministic, synthetic).
    alpha, beta, num_classes = 1.0, 1.0, 10

    # Case 1: small batch, single (partial) tile.
    n1 = 32
    pred1 = jax.random.normal(k1, (n1, num_classes), dtype=jnp.float32) * 2.0
    labels1 = jax.random.randint(k2, (n1,), 0, num_classes, dtype=jnp.int32)
    loss1 = jax.block_until_ready(mae_and_rce(pred1, labels1, alpha=alpha, beta=beta))
    ref1 = _reference(pred1, labels1, alpha, beta, num_classes)
    assert jnp.allclose(loss1, ref1, rtol=1e-5, atol=1e-5), (loss1, ref1)

    # Case 2: several tiles + a partial last tile (tile size capped to exercise the
    # parallel grid, the per-tile partial outputs, and the last-tile mask).
    n2 = 300
    pred2 = jax.random.normal(k3, (n2, num_classes), dtype=jnp.float32) * 3.0
    labels2 = jax.random.randint(k4, (n2,), 0, num_classes, dtype=jnp.int32)
    loss2 = jax.block_until_ready(
        mae_and_rce(pred2, labels2, alpha=alpha, beta=beta, tn_cap=128))
    ref2 = _reference(pred2, labels2, alpha, beta, num_classes)
    assert jnp.allclose(loss2, ref2, rtol=1e-5, atol=1e-5), (loss2, ref2)

    print("KERNEL_OK")
</pallas_src>

<mosaic_0001>
module attributes {stable_mosaic.version = 11 : i64} {
  func.func @_mae_rce_kernel(%arg0: i32, %arg1: memref<32x10xf32, #tpu.memory_space<vmem>>, %arg2: memref<1x32xi32, #tpu.memory_space<vmem>>, %arg3: memref<1x128xf32, #tpu.memory_space<vmem>>) attributes {dimension_semantics = [#tpu.dimension_semantics<parallel>], iteration_bounds = array<i64: 1>, scalar_prefetch = 0 : i64, scratch_operands = 0 : i64, tpu.core_type = #tpu.core_type<tc>, window_params = [{transform_indices = @transform_0, window_bounds = array<i64: 32, 10>}, {transform_indices = @transform_1, window_bounds = array<i64: 1, 32>}, {transform_indices = @transform_2, window_bounds = array<i64: 1, 128>}]} {
    %c0 = arith.constant 0 : index
    %c0_0 = arith.constant 0 : index
    %0 = vector.load %arg1[%c0, %c0_0] : memref<32x10xf32, #tpu.memory_space<vmem>>, vector<32x10xf32>
    %1 = tpu.transpose %0, [1, 0] : vector<32x10xf32> -> vector<10x32xf32>
    %c0_1 = arith.constant 0 : index
    %c0_2 = arith.constant 0 : index
    %2 = vector.load %arg2[%c0_1, %c0_2] : memref<1x32xi32, #tpu.memory_space<vmem>>, vector<1x32xi32>
    %cst = arith.constant dense<0xFF800000> : vector<32xf32>
    %3 = vector.multi_reduction <maximumf>, %1, %cst [0] : vector<10x32xf32> to vector<32xf32>
    %4 = vector.shape_cast %3 : vector<32xf32> to vector<1x32xf32>
    %5 = vector.broadcast %4 : vector<1x32xf32> to vector<10x32xf32>
    %6 = arith.subf %1, %5 : vector<10x32xf32>
    %7 = math.exp %6 : vector<10x32xf32>
    %cst_3 = arith.constant dense<0.000000e+00> : vector<32xf32>
    %8 = vector.multi_reduction <add>, %7, %cst_3 [0] : vector<10x32xf32> to vector<32xf32>
    %9 = vector.shape_cast %8 : vector<32xf32> to vector<1x32xf32>
    %cst_4 = arith.constant 1.000000e+00 : f32
    %10 = vector.broadcast %cst_4 : f32 to vector<1x32xf32>
    %11 = arith.divf %10, %9 : vector<1x32xf32>
    %12 = tpu.iota {dimensions = array<i32: 0>} : vector<10x1xi32>
    %13 = vector.broadcast %12 : vector<10x1xi32> to vector<10x32xi32>
    %14 = vector.broadcast %2 : vector<1x32xi32> to vector<10x32xi32>
    %15 = arith.cmpi eq, %13, %14 : vector<10x32xi32>
    %cst_5 = arith.constant 0.000000e+00 : f32
    %16 = vector.broadcast %cst_5 : f32 to vector<10x32xf32>
    %17 = arith.select %15, %7, %16 : vector<10x32xi1>, vector<10x32xf32>
    %cst_6 = arith.constant dense<0.000000e+00> : vector<32xf32>
    %18 = vector.multi_reduction <add>, %17, %cst_6 [0] : vector<10x32xf32> to vector<32xf32>
    %19 = vector.shape_cast %18 : vector<32xf32> to vector<1x32xf32>
    %20 = arith.mulf %19, %11 : vector<1x32xf32>
    %cst_7 = arith.constant 1.000000e-07 : f32
    %21 = vector.broadcast %cst_7 : f32 to vector<1x32xf32>
    %22 = arith.mulf %21, %9 : vector<1x32xf32>
    %23 = vector.broadcast %22 : vector<1x32xf32> to vector<10x32xf32>
    %24 = arith.maximumf %7, %23 : vector<10x32xf32>
    %cst_8 = arith.constant dense<0.000000e+00> : vector<32xf32>
    %25 = vector.multi_reduction <add>, %24, %cst_8 [0] : vector<10x32xf32> to vector<32xf32>
    %26 = vector.shape_cast %25 : vector<32xf32> to vector<1x32xf32>
    %27 = arith.mulf %26, %11 : vector<1x32xf32>
    %cst_9 = arith.constant 1.000000e-07 : f32
    %28 = vector.broadcast %cst_9 : f32 to vector<1x32xf32>
    %29 = arith.maximumf %20, %28 : vector<1x32xf32>
    %cst_10 = arith.constant 1.000000e+00 : f32
    %30 = vector.broadcast %cst_10 : f32 to vector<1x32xf32>
    %31 = arith.subf %30, %20 : vector<1x32xf32>
    %cst_11 = arith.constant 1.000000e+00 : f32
    %32 = vector.broadcast %cst_11 : f32 to vector<1x32xf32>
    %33 = arith.mulf %32, %31 : vector<1x32xf32>
    %34 = arith.subf %27, %29 : vector<1x32xf32>
    %cst_12 = arith.constant 9.21034049 : f32
    %35 = vector.broadcast %cst_12 : f32 to vector<1x32xf32>
    %36 = arith.mulf %35, %34 : vector<1x32xf32>
    %37 = arith.addf %33, %36 : vector<1x32xf32>
    %38 = tpu.iota {dimensions = array<i32: 1>} : vector<1x128xi32>
    %c0_i32 = arith.constant 0 : i32
    %39 = arith.cmpi eq, %arg0, %c0_i32 : i32
    %40 = arith.extui %39 : i1 to i32
    %c0_i32_13 = arith.constant 0 : i32
    %41 = arith.cmpi ne, %40, %c0_i32_13 : i32
    scf.if %41 {
      %c32_i32 = arith.constant 32 : i32
      %45 = arith.muli %arg0, %c32_i32 : i32
      %46 = tpu.iota {dimensions = array<i32: 1>} : vector<1x32xi32>
      %47 = vector.broadcast %45 : i32 to vector<1x32xi32>
      %48 = arith.addi %47, %46 : vector<1x32xi32>
      %c32_i32_16 = arith.constant 32 : i32
      %49 = vector.broadcast %c32_i32_16 : i32 to vector<1x32xi32>
      %50 = arith.cmpi slt, %48, %49 : vector<1x32xi32>
      %cst_17 = arith.constant 0.000000e+00 : f32
      %51 = vector.broadcast %cst_17 : f32 to vector<1x32xf32>
      %52 = arith.select %50, %37, %51 : vector<1x32xi1>, vector<1x32xf32>
      %53 = vector.shape_cast %52 : vector<1x32xf32> to vector<1x1x32xf32>
      %cst_18 = arith.constant dense<0.000000e+00> : vector<1xf32>
      %54 = vector.multi_reduction <add>, %53, %cst_18 [1, 2] : vector<1x1x32xf32> to vector<1xf32>
      %55 = vector.shape_cast %54 : vector<1xf32> to vector<1x1x1xf32>
      %56 = vector.extract %55[0, 0, 0] : f32 from vector<1x1x1xf32>
      %c0_i32_19 = arith.constant 0 : i32
      %57 = vector.broadcast %c0_i32_19 : i32 to vector<1x128xi32>
      %58 = arith.cmpi eq, %38, %57 : vector<1x128xi32>
      %cst_20 = arith.constant 0.000000e+00 : f32
      %59 = vector.broadcast %56 : f32 to vector<1x128xf32>
      %60 = vector.broadcast %cst_20 : f32 to vector<1x128xf32>
      %61 = arith.select %58, %59, %60 : vector<1x128xi1>, vector<1x128xf32>
      %c0_21 = arith.constant 0 : index
      %c0_22 = arith.constant 0 : index
      %62 = vector.load %arg3[%c0_21, %c0_22] : memref<1x128xf32, #tpu.memory_space<vmem>>, vector<1x128xf32>
      tpu.vector_store %arg3[%c0_21, %c0_22], %61 {strides = array<i32>} : memref<1x128xf32, #tpu.memory_space<vmem>>, vector<1x128xf32>,
    } else {
    }
    %c0_i32_14 = arith.constant 0 : i32
    %42 = arith.cmpi ne, %arg0, %c0_i32_14 : i32
    %43 = arith.extui %42 : i1 to i32
    %c0_i32_15 = arith.constant 0 : i32
    %44 = arith.cmpi ne, %43, %c0_i32_15 : i32
    scf.if %44 {
      %45 = vector.shape_cast %37 : vector<1x32xf32> to vector<1x1x32xf32>
      %cst_16 = arith.constant dense<0.000000e+00> : vector<1xf32>
      %46 = vector.multi_reduction <add>, %45, %cst_16 [1, 2] : vector<1x1x32xf32> to vector<1xf32>
      %47 = vector.shape_cast %46 : vector<1xf32> to vector<1x1x1xf32>
      %48 = vector.extract %47[0, 0, 0] : f32 from vector<1x1x1xf32>
      %c0_i32_17 = arith.constant 0 : i32
      %49 = vector.broadcast %c0_i32_17 : i32 to vector<1x128xi32>
      %50 = arith.cmpi eq, %38, %49 : vector<1x128xi32>
      %cst_18 = arith.constant 0.000000e+00 : f32
      %51 = vector.broadcast %48 : f32 to vector<1x128xf32>
      %52 = vector.broadcast %cst_18 : f32 to vector<1x128xf32>
      %53 = arith.select %50, %51, %52 : vector<1x128xi1>, vector<1x128xf32>
      %c0_19 = arith.constant 0 : index
      %c0_20 = arith.constant 0 : index
      %54 = vector.load %arg3[%c0_19, %c0_20] : memref<1x128xf32, #tpu.memory_space<vmem>>, vector<1x128xf32>
      tpu.vector_store %arg3[%c0_19, %c0_20], %53 {strides = array<i32>} : memref<1x128xf32, #tpu.memory_space<vmem>>, vector<1x128xf32>,
    } else {
    }
    return
  }
  func.func @transform_0(%arg0: i32) -> (i32, i32) {
    %c0_i32 = arith.constant 0 : i32
    %c0_i32_0 = arith.constant 0 : i32
    return %arg0, %c0_i32 : i32, i32
  }
  func.func @transform_1(%arg0: i32) -> (i32, i32) {
    %c0_i32 = arith.constant 0 : i32
    %c0_i32_0 = arith.constant 0 : i32
    return %c0_i32, %arg0 : i32, i32
  }
  func.func @transform_2(%arg0: i32) -> (i32, i32) {
    %c0_i32 = arith.constant 0 : i32
    %c0_i32_0 = arith.constant 0 : i32
    return %c0_i32, %arg0 : i32, i32
  }
}

module attributes {stable_mosaic.version = 11 : i64} {
  func.func @_mae_rce_kernel(%arg0: i32, %arg1: memref<10x32xf32, #tpu.memory_space<vmem>>, %arg2: memref<1x32xi32, #tpu.memory_space<vmem>>, %arg3: memref<1x128xf32, #tpu.memory_space<vmem>>) attributes {dimension_semantics = [#tpu.dimension_semantics<parallel>], iteration_bounds = array<i64: 1>, scalar_prefetch = 0 : i64, scratch_operands = 0 : i64, tpu.core_type = #tpu.core_type<tc>, window_params = [{transform_indices = @transform_0, window_bounds = array<i64: 10, 32>}, {transform_indices = @transform_1, window_bounds = array<i64: 1, 32>}, {transform_indices = @transform_2, window_bounds = array<i64: 1, 128>}]} {
    %c0 = arith.constant 0 : index
    %c0_0 = arith.constant 0 : index
    %0 = vector.load %arg1[%c0, %c0_0] : memref<10x32xf32, #tpu.memory_space<vmem>>, vector<10x32xf32>
    %c0_1 = arith.constant 0 : index
    %c0_2 = arith.constant 0 : index
    %1 = vector.load %arg2[%c0_1, %c0_2] : memref<1x32xi32, #tpu.memory_space<vmem>>, vector<1x32xi32>
    %cst = arith.constant dense<0xFF800000> : vector<32xf32>
    %2 = vector.multi_reduction <maximumf>, %0, %cst [0] : vector<10x32xf32> to vector<32xf32>
    %3 = vector.shape_cast %2 : vector<32xf32> to vector<1x32xf32>
    %4 = vector.broadcast %3 : vector<1x32xf32> to vector<10x32xf32>
    %5 = arith.subf %0, %4 : vector<10x32xf32>
    %6 = math.exp %5 : vector<10x32xf32>
    %cst_3 = arith.constant dense<0.000000e+00> : vector<32xf32>
    %7 = vector.multi_reduction <add>, %6, %cst_3 [0] : vector<10x32xf32> to vector<32xf32>
    %8 = vector.shape_cast %7 : vector<32xf32> to vector<1x32xf32>
    %cst_4 = arith.constant 1.000000e+00 : f32
    %9 = vector.broadcast %cst_4 : f32 to vector<1x32xf32>
    %10 = arith.divf %9, %8 : vector<1x32xf32>
    %11 = tpu.iota {dimensions = array<i32: 0>} : vector<10x1xi32>
    %12 = vector.broadcast %11 : vector<10x1xi32> to vector<10x32xi32>
    %13 = vector.broadcast %1 : vector<1x32xi32> to vector<10x32xi32>
    %14 = arith.cmpi eq, %12, %13 : vector<10x32xi32>
    %cst_5 = arith.constant 0.000000e+00 : f32
    %15 = vector.broadcast %cst_5 : f32 to vector<10x32xf32>
    %16 = arith.select %14, %6, %15 : vector<10x32xi1>, vector<10x32xf32>
    %cst_6 = arith.constant dense<0.000000e+00> : vector<32xf32>
    %17 = vector.multi_reduction <add>, %16, %cst_6 [0] : vector<10x32xf32> to vector<32xf32>
    %18 = vector.shape_cast %17 : vector<32xf32> to vector<1x32xf32>
    %19 = arith.mulf %18, %10 : vector<1x32xf32>
    %cst_7 = arith.constant 1.000000e-07 : f32
    %20 = vector.broadcast %cst_7 : f32 to vector<1x32xf32>
    %21 = arith.mulf %20, %8 : vector<1x32xf32>
    %22 = vector.broadcast %21 : vector<1x32xf32> to vector<10x32xf32>
    %23 = arith.maximumf %6, %22 : vector<10x32xf32>
    %cst_8 = arith.constant dense<0.000000e+00> : vector<32xf32>
    %24 = vector.multi_reduction <add>, %23, %cst_8 [0] : vector<10x32xf32> to vector<32xf32>
    %25 = vector.shape_cast %24 : vector<32xf32> to vector<1x32xf32>
    %26 = arith.mulf %25, %10 : vector<1x32xf32>
    %cst_9 = arith.constant 1.000000e-07 : f32
    %27 = vector.broadcast %cst_9 : f32 to vector<1x32xf32>
    %28 = arith.maximumf %19, %27 : vector<1x32xf32>
    %cst_10 = arith.constant 1.000000e+00 : f32
    %29 = vector.broadcast %cst_10 : f32 to vector<1x32xf32>
    %30 = arith.subf %29, %19 : vector<1x32xf32>
    %cst_11 = arith.constant 1.000000e+00 : f32
    %31 = vector.broadcast %cst_11 : f32 to vector<1x32xf32>
    %32 = arith.mulf %31, %30 : vector<1x32xf32>
    %33 = arith.subf %26, %28 : vector<1x32xf32>
    %cst_12 = arith.constant 9.21034049 : f32
    %34 = vector.broadcast %cst_12 : f32 to vector<1x32xf32>
    %35 = arith.mulf %34, %33 : vector<1x32xf32>
    %36 = arith.addf %32, %35 : vector<1x32xf32>
    %37 = tpu.iota {dimensions = array<i32: 1>} : vector<1x128xi32>
    %c0_i32 = arith.constant 0 : i32
    %38 = arith.cmpi eq, %arg0, %c0_i32 : i32
    %39 = arith.extui %38 : i1 to i32
    %c0_i32_13 = arith.constant 0 : i32
    %40 = arith.cmpi ne, %39, %c0_i32_13 : i32
    scf.if %40 {
      %c32_i32 = arith.constant 32 : i32
      %44 = arith.muli %arg0, %c32_i32 : i32
      %45 = tpu.iota {dimensions = array<i32: 1>} : vector<1x32xi32>
      %46 = vector.broadcast %44 : i32 to vector<1x32xi32>
      %47 = arith.addi %46, %45 : vector<1x32xi32>
      %c32_i32_16 = arith.constant 32 : i32
      %48 = vector.broadcast %c32_i32_16 : i32 to vector<1x32xi32>
      %49 = arith.cmpi slt, %47, %48 : vector<1x32xi32>
      %cst_17 = arith.constant 0.000000e+00 : f32
      %50 = vector.broadcast %cst_17 : f32 to vector<1x32xf32>
      %51 = arith.select %49, %36, %50 : vector<1x32xi1>, vector<1x32xf32>
      %52 = vector.shape_cast %51 : vector<1x32xf32> to vector<1x1x32xf32>
      %cst_18 = arith.constant dense<0.000000e+00> : vector<1xf32>
      %53 = vector.multi_reduction <add>, %52, %cst_18 [1, 2] : vector<1x1x32xf32> to vector<1xf32>
      %54 = vector.shape_cast %53 : vector<1xf32> to vector<1x1x1xf32>
      %55 = vector.extract %54[0, 0, 0] : f32 from vector<1x1x1xf32>
      %c0_i32_19 = arith.constant 0 : i32
      %56 = vector.broadcast %c0_i32_19 : i32 to vector<1x128xi32>
      %57 = arith.cmpi eq, %37, %56 : vector<1x128xi32>
      %cst_20 = arith.constant 0.000000e+00 : f32
      %58 = vector.broadcast %55 : f32 to vector<1x128xf32>
      %59 = vector.broadcast %cst_20 : f32 to vector<1x128xf32>
      %60 = arith.select %57, %58, %59 : vector<1x128xi1>, vector<1x128xf32>
      %c0_21 = arith.constant 0 : index
      %c0_22 = arith.constant 0 : index
      %61 = vector.load %arg3[%c0_21, %c0_22] : memref<1x128xf32, #tpu.memory_space<vmem>>, vector<1x128xf32>
      tpu.vector_store %arg3[%c0_21, %c0_22], %60 {strides = array<i32>} : memref<1x128xf32, #tpu.memory_space<vmem>>, vector<1x128xf32>,
    } else {
    }
    %c0_i32_14 = arith.constant 0 : i32
    %41 = arith.cmpi ne, %arg0, %c0_i32_14 : i32
    %42 = arith.extui %41 : i1 to i32
    %c0_i32_15 = arith.constant 0 : i32
    %43 = arith.cmpi ne, %42, %c0_i32_15 : i32
    scf.if %43 {
      %44 = vector.shape_cast %36 : vector<1x32xf32> to vector<1x1x32xf32>
      %cst_16 = arith.constant dense<0.000000e+00> : vector<1xf32>
      %45 = vector.multi_reduction <add>, %44, %cst_16 [1, 2] : vector<1x1x32xf32> to vector<1xf32>
      %46 = vector.shape_cast %45 : vector<1xf32> to vector<1x1x1xf32>
      %47 = vector.extract %46[0, 0, 0] : f32 from vector<1x1x1xf32>
      %c0_i32_17 = arith.constant 0 : i32
      %48 = vector.broadcast %c0_i32_17 : i32 to vector<1x128xi32>
      %49 = arith.cmpi eq, %37, %48 : vector<1x128xi32>
      %cst_18 = arith.constant 0.000000e+00 : f32
      %50 = vector.broadcast %47 : f32 to vector<1x128xf32>
      %51 = vector.broadcast %cst_18 : f32 to vector<1x128xf32>
      %52 = arith.select %49, %50, %51 : vector<1x128xi1>, vector<1x128xf32>
      %c0_19 = arith.constant 0 : index
      %c0_20 = arith.constant 0 : index
      %53 = vector.load %arg3[%c0_19, %c0_20] : memref<1x128xf32, #tpu.memory_space<vmem>>, vector<1x128xf32>
      tpu.vector_store %arg3[%c0_19, %c0_20], %52 {strides = array<i32>} : memref<1x128xf32, #tpu.memory_space<vmem>>, vector<1x128xf32>,
    } else {
    }
    return
  }
  func.func @transform_0(%arg0: i32) -> (i32, i32) {
    %c0_i32 = arith.constant 0 : i32
    %c0_i32_0 = arith.constant 0 : i32
    return %c0_i32, %arg0 : i32, i32
  }
  func.func @transform_1(%arg0: i32) -> (i32, i32) {
    %c0_i32 = arith.constant 0 : i32
    %c0_i32_0 = arith.constant 0 : i32
    return %c0_i32, %arg0 : i32, i32
  }
  func.func @transform_2(%arg0: i32) -> (i32, i32) {
    %c0_i32 = arith.constant 0 : i32
    %c0_i32_0 = arith.constant 0 : i32
    return %c0_i32, %arg0 : i32, i32
  }
}

</mosaic_0001>

<bundles_post_ra>
// kernel: tpu_custom_call.1
= control target key start
LH: loop header
LB: loop body
LE: loop exit
PB: predicated region body
PF: predicated region fallthrough
CT: control target
= control target key end

     0   :  { %s250_s0 = inlined_call_operand.vmem [shape: f32[32,10], index: 0, kind: input, shape index: {}]   ;;  %s251_s1 = inlined_call_operand.vmem [shape: s32[1,32], index: 1, kind: input, shape index: {}]   ;;  %s252_s2 = inlined_call_operand.hbm [shape: f32[1,128], index: 2, kind: output, shape index: {}]  }
   0x1   :  { %v12_v0 = vld [vmem:[%s250_s0] sm:$0xff] }
   0x2   :  { %16 = vxpose.xlu0.b32.start [1/4] (short) (narrow) %v12_v0, 16 }
   0x3   :  { %7 = vsyncpa [#allocation3], 0  ;;  %v13_v1 = vld [vmem:[%s250_s0 + $0x8] sm:$0xff]  ;;  %v14_v2 = vld [vmem:[%s250_s0 + $0x10] sm:$0xff]  ;;  %vm49_vm0 = vcmask 261120   ;;  %vm51_vm1 = vcmask 254976   ;;  %v77_v19 = vlaneseq }
   0x4   :  { %v15_v3 = vld [vmem:[%s250_s0 + $0x18] sm:$0xff]  ;;  %v175_v21 = vld [vmem:[%s251_s1] ss:$0 sm:$0xff]  ;;  %vm127_vm5 = vcmask 253952   ;;  %s208_s1 = smov [#allocation2]  }
   0x5   :  { %v78_v20 = vshrl.u32 %v77_v19, 7  ;;  %v117_v61 = vand.u32 127, %v77_v19  ;;  %s167_s18 = sshll.u32 %s208_s1, 4  ;;  %s168_s18 = int_to_ptr.vmem [resolvable:$true] %s167_s18 }
   0x6   :  { %17 = vxpose.xlu0.b32.cont [2/4] (short) (narrow) %v13_v1, 16  ;;  %s186_s20 = scalar_lea.vmem %s168_s18, 16  ;;  %s190_s21 = scalar_lea.vmem %s168_s18, 32 }
   0x7   :  { %v79_v22 = vadd.s32 8, %v78_v20  ;;  %vm84_vm2 = vcmp.eq.s32.totalorder %v78_v20, %v175_v21  ;;  %vm125_vm4 = vcmp.lt.s32.totalorder %v117_v61, 32  ;;  %vm138_vm6 = vcmp.eq.s32.totalorder %v117_v61, 0  ;;  %p187_p0 = scmp.ne.s32.totalorder %s168_s18, %s186_s20  ;;  %p191_p1 = scmp.lt.s32.totalorder %s168_s18, %s168_s18 }
   0x8   :  { %p192_p2 = scmp.lt.s32.totalorder %s190_s21, %s186_s20 }
   0x9   :  { %vm85_vm3 = vcmp.eq.s32.totalorder %v79_v22, %v175_v21 }
   0xa   :  { %18 = vxpose.xlu0.b32.cont [3/4] (short) (narrow) %v14_v2, 16  ;;  %p193_p3 = por %p192_p2, %p191_p1 }
   0xc   :  { %p194_p4 = pnand %p193_p3, %p187_p0 }
   0xe   :  { %19 = vxpose.xlu0.b32.end [4/4] (short) (narrow) %v15_v3, 16 }
  0x7e   :  { %v32_v4 = vpop.trf.xlu0 }
  0x7f   :  { %v50_v6 = vsel %vm49_vm0, %v32_v4, -inf }
  0x82   :  { %v33_v5 = vpop.trf.xlu0 }
  0x83   :  { %v52_v7 = vsel %vm51_vm1, %v33_v5, -inf }
  0x84   :  { %v53_v8 = vmax.f32 %v50_v6, %v52_v7 }
  0x86   :  { %v54_v9 = vrot.slane %v53_v8, 4 }
  0x88   :  { %v55_v10 = vmax.f32 %v53_v8, %v54_v9 }
  0x8a   :  { %v56_v11 = vrot.slane %v55_v10, 2 }
  0x8c   :  { %v57_v12 = vmax.f32 %v55_v10, %v56_v11 }
  0x8e   :  { %v58_v13 = vrot.slane %v57_v12, 1 }
  0x90   :  { %v59_v14 = vmax.f32 %v57_v12, %v58_v13 }
  0x92   :  { %v60_v15 = vsub.f32 %v32_v4, %v59_v14  ;;  %v61_v16 = vsub.f32 %v33_v5, %v59_v14 }
  0x94   :  { %v62_v17 = vmul.f32 1.442695, %v60_v15  ;;  %v64_v18 = vmul.f32 1.442695, %v61_v16 }
  0x96   :  { %180 = vpow2.f32 %v62_v17 }
  0x97   :  { %182 = vpow2.f32 %v64_v18 }
  0xa3   :  { %v181_v23 = vpop.eup %180 }
  0xa4   :  { %v183_v24 = vpop.eup %182  ;;  %v66_v25 = vsel %vm49_vm0, %v181_v23, 0.0  ;;  %v86_v26 = vsel %vm84_vm2, %v181_v23, 0.0 }
  0xa5   :  { %v67_v27 = vsel %vm51_vm1, %v183_v24, 0.0  ;;  %v87_v28 = vsel %vm85_vm3, %v183_v24, 0.0  ;;  %v88_v30 = vsel %vm49_vm0, %v86_v26, 0.0 }
  0xa6   :  { %v68_v29 = vadd.f32 %v67_v27, %v66_v25  ;;  %v89_v31 = vsel %vm51_vm1, %v87_v28, 0.0 }
  0xa7   :  { %v90_v33 = vadd.f32 %v89_v31, %v88_v30 }
  0xa8   :  { %v69_v32 = vrot.slane %v68_v29, 4 }
  0xa9   :  { %v91_v36 = vrot.slane %v90_v33, 4 }
  0xaa   :  { %v70_v34 = vadd.f32 %v69_v32, %v68_v29 }
  0xab   :  { %v92_v39 = vadd.f32 %v91_v36, %v90_v33 }
  0xac   :  { %v71_v35 = vrot.slane %v70_v34, 2 }
  0xad   :  { %v93_v42 = vrot.slane %v92_v39, 2 }
  0xae   :  { %v72_v37 = vadd.f32 %v71_v35, %v70_v34 }
  0xaf   :  { %v94_v48 = vadd.f32 %v93_v42, %v92_v39 }
  0xb0   :  { %v73_v38 = vrot.slane %v72_v37, 1 }
  0xb1   :  { %v95_v51 = vrot.slane %v94_v48, 1 }
  0xb2   :  { %v74_v40 = vadd.f32 %v73_v38, %v72_v37 }
  0xb3   :  { %v96_v54 = vadd.f32 %v95_v51, %v94_v48 }
  0xb4   :  { %184 = vrcp.f32 %v74_v40  ;;  %v98_v41 = vmul.f32 1e-07, %v74_v40 }
  0xb6   :  { %v99_v43 = vmax.f32 %v181_v23, %v98_v41  ;;  %v100_v44 = vmax.f32 %v183_v24, %v98_v41 }
  0xb8   :  { %v101_v45 = vsel %vm49_vm0, %v99_v43, 0.0  ;;  %v102_v46 = vsel %vm51_vm1, %v100_v44, 0.0 }
  0xb9   :  { %v103_v47 = vadd.f32 %v102_v46, %v101_v45 }
  0xbb   :  { %v104_v49 = vrot.slane %v103_v47, 4 }
  0xbd   :  { %v105_v50 = vadd.f32 %v104_v49, %v103_v47 }
  0xbf   :  { %v106_v52 = vrot.slane %v105_v50, 2 }
  0xc1   :  { %v185_v53 = vpop.eup %184  ;;  %v107_v55 = vadd.f32 %v106_v52, %v105_v50 }
  0xc2   :  { %v97_v56 = vmul.f32 %v185_v53, %v96_v54 }
  0xc3   :  { %v108_v57 = vrot.slane %v107_v55, 1 }
  0xc4   :  { %v111_v60 = vmax.f32 %v97_v56, 1e-07  ;;  %v112_v63 = vsub.f32 1.0, %v97_v56 }
  0xc5   :  { %v109_v58 = vadd.f32 %v108_v57, %v107_v55 }
  0xc7   :  { %v110_v59 = vmul.f32 %v185_v53, %v109_v58 }
  0xc9   :  { %v113_v62 = vsub.f32 %v110_v59, %v111_v60 }
  0xcb   :  { %v114_v0 = vmul.f32 9.2103405, %v113_v62 }
  0xcd   :  { %v115_v1 = vadd.f32 %v114_v0, %v112_v63 }
  0xcf   :  { %v126_v2 = vsel %vm125_vm4, %v115_v1, 0.0 }
  0xd0   :  { %v128_v3 = vsel %vm127_vm5, %v126_v2, 0.0 }
  0xd1   :  { %129 = vadd.xlane.f32.xlu1 %v128_v3 }
 0x15a   :  { %v130_v4 = vpop.xlane.xlu1 %129 }
 0x15b   :  { %v131_v5 = vrot.slane %v130_v4, 4 }
 0x15d   :  { %v132_v6 = vadd.f32 %v131_v5, %v130_v4 }
 0x15f   :  { %v133_v7 = vrot.slane %v132_v6, 2 }
 0x161   :  { %v134_v8 = vadd.f32 %v133_v7, %v132_v6 }
 0x163   :  { %v135_v9 = vrot.slane %v134_v8, 1 }
 0x165   :  { %v136_v10 = vadd.f32 %v135_v9, %v134_v8 }
 0x167   :  { %176 = vpush %v136_v10 }
 0x198   :  { %s177_s19 = spop %176 }
 0x199   :  { %v139_v11 = vstv %s177_s19 }
 0x19a   :  { %v140_v12 = vsel %vm138_vm6, %v139_v11, 0.0 }
 0x19b   :  { %141 = vst [vmem:[#allocation2] sm:$0x1] %v140_v12 }
 0x19c   :  { %197 = shalt.err (!%p194_p4)
}
 0x19d   :  { %170 = dma.vmem_to_hbm [thread:$0]  %s168_s18, 16, %s252_s2, [#allocation3]  }
 0x19e   :  { %206 = dma.done.wait [#allocation3], 16  }
 0x19f   :  { %207 = vsyncadd [#allocation3], 4294967280 }
 0x1a0   :  { %174 = vsyncpa [#allocation3], 1 }

// kernel: tpu_custom_call.1
= control target key start
LH: loop header
LB: loop body
LE: loop exit
PB: predicated region body
PF: predicated region fallthrough
CT: control target
= control target key end

     0   :  { %7 = vsyncpa [#allocation3], 0  ;;  %s249_s0 = inlined_call_operand.hbm [shape: f32[10,32], index: 0, kind: input, shape index: {}]   ;;  %s250_s1 = inlined_call_operand.vmem [shape: s32[1,32], index: 1, kind: input, shape index: {}]   ;;  %s251_s2 = inlined_call_operand.hbm [shape: f32[1,128], index: 2, kind: output, shape index: {}]  }
   0x1   :  { %8 = vsyncpa [#allocation4], 0  ;;  %s213_s9 = smov [#allocation2]  }
   0x2   :  { %s14_s10 = sshll.u32 %s213_s9, 4  ;;  %s15_s10 = int_to_ptr.vmem [resolvable:$true] %s14_s10 }
   0x3   :  { %s177_s11 = scalar_lea.vmem %s15_s10, 256  ;;  %p182_p1 = scmp.lt.s32.totalorder %s15_s10, %s15_s10 }
   0x4   :  { %p178_p0 = scmp.ne.s32.totalorder %s15_s10, %s177_s11  ;;  %p183_p2 = scmp.lt.s32.totalorder %s177_s11, %s177_s11 }
   0x6   :  { %p184_p3 = por %p183_p2, %p182_p1 }
   0x8   :  { %p185_p4 = pnand %p184_p3, %p178_p0 }
   0xa   :  { %188 = shalt.err (!%p185_p4)
}
   0xb   :  { %s214_s12 = smov 128   ;;  %s215_s13 = smov 8  }
   0xc   :  { %20 = dma.hbm_to_vmem [thread:$0]  %s249_s0, 256, %s15_s10, [#allocation3], %s214_s12, %s214_s12, %s215_s13  }
   0xd   :  { %209 = dma.done.wait [#allocation3], 256  }
   0xe   :  { %210 = vsyncadd [#allocation3], 4294967040  ;;  %vm29_vm0 = vcmask 261120   ;;  %vm31_vm1 = vcmask 254976   ;;  %v26_v0 = vld [vmem:[#allocation2] sm:$0xff]  ;;  %v57_v15 = vlaneseq  ;;  %vm107_vm5 = vcmask 253952  }
   0xf   :  { %v27_v1 = vld [vmem:[#allocation2 + $0x8] sm:$0x3]  ;;  %v30_v2 = vsel %vm29_vm0, %v26_v0, -inf  ;;  %v156_v17 = vld [vmem:[%s250_s1] ss:$0 sm:$0xff]  ;;  %s216_s1 = smov [#allocation5]  }
  0x10   :  { %v32_v3 = vsel %vm31_vm1, %v27_v1, -inf  ;;  %v58_v16 = vshrl.u32 %v57_v15, 7  ;;  %v97_v57 = vand.u32 127, %v57_v15  ;;  %s147_s17 = sshll.u32 %s216_s1, 4  ;;  %s148_s17 = int_to_ptr.vmem [resolvable:$true] %s147_s17 }
  0x11   :  { %v33_v4 = vmax.f32 %v30_v2, %v32_v3  ;;  %s189_s19 = scalar_lea.vmem %s148_s17, 16  ;;  %s193_s20 = scalar_lea.vmem %s148_s17, 32 }
  0x12   :  { %v59_v18 = vadd.s32 8, %v58_v16  ;;  %vm64_vm2 = vcmp.eq.s32.totalorder %v58_v16, %v156_v17  ;;  %vm105_vm4 = vcmp.lt.s32.totalorder %v97_v57, 32  ;;  %vm118_vm6 = vcmp.eq.s32.totalorder %v97_v57, 0  ;;  %p190_p5 = scmp.ne.s32.totalorder %s148_s17, %s189_s19  ;;  %p194_p6 = scmp.lt.s32.totalorder %s148_s17, %s148_s17 }
  0x13   :  { %v34_v5 = vrot.slane %v33_v4, 4  ;;  %p195_p7 = scmp.lt.s32.totalorder %s193_s20, %s189_s19 }
  0x14   :  { %vm65_vm3 = vcmp.eq.s32.totalorder %v59_v18, %v156_v17 }
  0x15   :  { %v35_v6 = vmax.f32 %v33_v4, %v34_v5  ;;  %p196_p8 = por %p195_p7, %p194_p6 }
  0x17   :  { %v36_v7 = vrot.slane %v35_v6, 2  ;;  %p197_p9 = pnand %p196_p8, %p190_p5 }
  0x19   :  { %v37_v8 = vmax.f32 %v35_v6, %v36_v7 }
  0x1b   :  { %v38_v9 = vrot.slane %v37_v8, 1 }
  0x1d   :  { %v39_v10 = vmax.f32 %v37_v8, %v38_v9 }
  0x1f   :  { %v40_v11 = vsub.f32 %v26_v0, %v39_v10  ;;  %v41_v12 = vsub.f32 %v27_v1, %v39_v10 }
  0x21   :  { %v42_v13 = vmul.f32 1.442695, %v40_v11  ;;  %v44_v14 = vmul.f32 1.442695, %v41_v12 }
  0x23   :  { %163 = vpow2.f32 %v42_v13 }
  0x24   :  { %165 = vpow2.f32 %v44_v14 }
  0x30   :  { %v164_v19 = vpop.eup %163 }
  0x31   :  { %v166_v20 = vpop.eup %165  ;;  %v46_v21 = vsel %vm29_vm0, %v164_v19, 0.0  ;;  %v66_v22 = vsel %vm64_vm2, %v164_v19, 0.0 }
  0x32   :  { %v47_v23 = vsel %vm31_vm1, %v166_v20, 0.0  ;;  %v67_v24 = vsel %vm65_vm3, %v166_v20, 0.0  ;;  %v68_v25 = vsel %vm29_vm0, %v66_v22, 0.0 }
  0x33   :  { %v48_v26 = vadd.f32 %v47_v23, %v46_v21  ;;  %v69_v27 = vsel %vm31_vm1, %v67_v24, 0.0 }
  0x34   :  { %v70_v28 = vadd.f32 %v69_v27, %v68_v25 }
  0x35   :  { %v49_v29 = vrot.slane %v48_v26, 4 }
  0x36   :  { %v71_v31 = vrot.slane %v70_v28, 4 }
  0x37   :  { %v50_v30 = vadd.f32 %v49_v29, %v48_v26 }
  0x38   :  { %v72_v34 = vadd.f32 %v71_v31, %v70_v28 }
  0x39   :  { %v51_v32 = vrot.slane %v50_v30, 2 }
  0x3a   :  { %v73_v37 = vrot.slane %v72_v34, 2 }
  0x3b   :  { %v52_v33 = vadd.f32 %v51_v32, %v50_v30 }
  0x3c   :  { %v74_v39 = vadd.f32 %v73_v37, %v72_v34 }
  0x3d   :  { %v53_v35 = vrot.slane %v52_v33, 1 }
  0x3e   :  { %v75_v45 = vrot.slane %v74_v39, 1 }
  0x3f   :  { %v54_v36 = vadd.f32 %v53_v35, %v52_v33 }
  0x40   :  { %v76_v48 = vadd.f32 %v75_v45, %v74_v39 }
  0x41   :  { %167 = vrcp.f32 %v54_v36  ;;  %v78_v38 = vmul.f32 1e-07, %v54_v36 }
  0x43   :  { %v79_v40 = vmax.f32 %v164_v19, %v78_v38  ;;  %v80_v41 = vmax.f32 %v166_v20, %v78_v38 }
  0x45   :  { %v81_v42 = vsel %vm29_vm0, %v79_v40, 0.0  ;;  %v82_v43 = vsel %vm31_vm1, %v80_v41, 0.0 }
  0x46   :  { %v83_v44 = vadd.f32 %v82_v43, %v81_v42 }
  0x48   :  { %v84_v46 = vrot.slane %v83_v44, 4 }
  0x4a   :  { %v85_v47 = vadd.f32 %v84_v46, %v83_v44 }
  0x4c   :  { %v86_v49 = vrot.slane %v85_v47, 2 }
  0x4e   :  { %v168_v50 = vpop.eup %167  ;;  %v87_v51 = vadd.f32 %v86_v49, %v85_v47 }
  0x4f   :  { %v77_v52 = vmul.f32 %v168_v50, %v76_v48 }
  0x50   :  { %v88_v53 = vrot.slane %v87_v51, 1 }
  0x51   :  { %v91_v55 = vmax.f32 %v77_v52, 1e-07  ;;  %v92_v58 = vsub.f32 1.0, %v77_v52 }
  0x52   :  { %v89_v54 = vadd.f32 %v88_v53, %v87_v51 }
  0x54   :  { %v90_v56 = vmul.f32 %v168_v50, %v89_v54 }
  0x56   :  { %v93_v59 = vsub.f32 %v90_v56, %v91_v55 }
  0x58   :  { %v94_v60 = vmul.f32 9.2103405, %v93_v59 }
  0x5a   :  { %v95_v61 = vadd.f32 %v94_v60, %v92_v58 }
  0x5c   :  { %v106_v62 = vsel %vm105_vm4, %v95_v61, 0.0 }
  0x5d   :  { %v108_v63 = vsel %vm107_vm5, %v106_v62, 0.0 }
  0x5e   :  { %109 = vadd.xlane.f32.xlu0 %v108_v63 }
  0xe7   :  { %v110_v0 = vpop.xlane.xlu0 %109 }
  0xe8   :  { %v111_v1 = vrot.slane %v110_v0, 4 }
  0xea   :  { %v112_v2 = vadd.f32 %v111_v1, %v110_v0 }
  0xec   :  { %v113_v3 = vrot.slane %v112_v2, 2 }
  0xee   :  { %v114_v4 = vadd.f32 %v113_v3, %v112_v2 }
  0xf0   :  { %v115_v5 = vrot.slane %v114_v4, 1 }
  0xf2   :  { %v116_v6 = vadd.f32 %v115_v5, %v114_v4 }
  0xf4   :  { %157 = vpush %v116_v6 }
 0x125   :  { %s158_s18 = spop %157 }
 0x126   :  { %v119_v7 = vstv %s158_s18 }
 0x127   :  { %v120_v8 = vsel %vm118_vm6, %v119_v7, 0.0 }
 0x128   :  { %121 = vst [vmem:[#allocation5] sm:$0x1] %v120_v8 }
 0x129   :  { %200 = shalt.err (!%p197_p9)
}
 0x12a   :  { %150 = dma.vmem_to_hbm [thread:$0]  %s148_s17, 16, %s251_s2, [#allocation4]  }
 0x12b   :  { %211 = dma.done.wait [#allocation4], 16  }
 0x12c   :  { %212 = vsyncadd [#allocation4], 4294967280 }
 0x12d   :  { %154 = vsyncpa [#allocation3], 1 }
 0x12e   :  { %155 = vsyncpa [#allocation4], 1 }

</bundles_post_ra>
